<compile_context>
chip_gen: v7x
topology: tpu7x:2x2x1
jax: 0.10.0
libtpu: 0.0.40
codegen_flags: <defaults>
</compile_context>

<pallas_src>
import math
from functools import partial

import jax
import jax.numpy as jnp
import numpy as np
from jax import lax
from jax.experimental import pallas as pl
from jax.experimental.pallas import tpu as pltpu

LANES = 128
MAX_BLOCK_ROWS = 4096   # (4096, 128) f32 block = 2 MiB


def _cdiv(a, b):
    return -(-a // b)


def _round_up(a, m):
    return _cdiv(a, m) * m


def _num_tensorcores_per_device():
    """2 TensorCores per addressable device on v4/v5p (megacore) and v7x; else 1."""
    try:
        kind = jax.devices()[0].device_kind.lower()
    except Exception:
        return 1
    if ("v4" in kind) or ("v5p" in kind) or ("v7" in kind) or ("7x" in kind):
        return 2
    return 1


def _make_bbce_kernel(n_inner, n_blocks, block_rows, tail_valid, tail_mask, has_phantom):
    """Builds the partial-sum kernel with all shape parameters closed over statically."""
    r8 = block_rows // 8

    def kernel(pred_ref, gt_ref, sgt_ref, spos_ref, sneg_ref):
        c = pl.program_id(0)   # split ("parallel")
        i = pl.program_id(1)   # inner reduction axis ("arbitrary")

        @pl.when(i == 0)
        def _():
            sgt_ref[...] = jnp.zeros_like(sgt_ref)
            spos_ref[...] = jnp.zeros_like(spos_ref)
            sneg_ref[...] = jnp.zeros_like(sneg_ref)

        def accumulate(p, g, valid=None):
            # Numerically stable softplus pair sharing one exp + one log1p:
            #   softplus(x)  = max(x, 0) + log1p(exp(-|x|))
            #   softplus(-x) = softplus(x) - x
            sp_pos = jnp.maximum(p, 0.0) + jnp.log1p(jnp.exp(-jnp.abs(p)))
            sp_neg = sp_pos - p
            pos_t = g * sp_neg              # gt * softplus(-pred)
            neg_t = (1.0 - g) * sp_pos      # (1-gt) * softplus(pred)
            if valid is not None:
                # pos_t and g are already zero where invalid (g was masked to 0).
                neg_t = jnp.where(valid, neg_t, 0.0)
            # In-block reduction to (8, 128): sublane-tile-aligned, pure VPU adds.
            sgt_ref[...] += jnp.sum(g.reshape(r8, 8, LANES), axis=0)
            spos_ref[...] += jnp.sum(pos_t.reshape(r8, 8, LANES), axis=0)
            sneg_ref[...] += jnp.sum(neg_t.reshape(r8, 8, LANES), axis=0)

        def full_block():
            accumulate(pred_ref[...].astype(jnp.float32),
                       gt_ref[...].astype(jnp.float32))

        def tail_block():
            # Mask pred/gt to zero BEFORE exp/log1p: out-of-bounds rows of a partial
            # block contain unspecified (possibly NaN) VMEM data.
            row = lax.broadcasted_iota(jnp.int32, (block_rows, LANES), 0)
            lane = lax.broadcasted_iota(jnp.int32, (block_rows, LANES), 1)
            valid = (row * LANES + lane) < tail_valid
            p = jnp.where(valid, pred_ref[...].astype(jnp.float32), 0.0)
            g = jnp.where(valid, gt_ref[...].astype(jnp.float32), 0.0)
            accumulate(p, g, valid=valid)

        if not (tail_mask or has_phantom):
            full_block()                      # hot loop: no masks, no branches
        elif n_blocks == 1:
            tail_block()                      # single (masked) block
        else:
            blk = c * n_inner + i             # logical block id
            last_real = n_blocks - 1
            if tail_mask:
                pl.when(blk < last_real)(full_block)
                pl.when(blk == last_real)(tail_block)
            else:                             # phantom-only (even split of clean blocks)
                pl.when(blk < n_blocks)(full_block)

    return kernel


@partial(jax.jit, static_argnames=("max_block_rows",))
def _bbce_impl(pred, gt, max_block_rows):
    assert pred.shape == gt.shape
    n_total = int(math.prod(pred.shape))
    assert n_total > 0

    # Native dtypes all the way to the kernel (cast happens in-kernel after the DMA).
    pred_f = pred.reshape(-1)
    gt_f = gt.reshape(-1)

    rows = _cdiv(n_total, LANES)
    # Multiple of 16 keeps blocks legal for f32 and packed (bf16) layouts alike.
    block_rows = min(_round_up(max_block_rows, 16), max(16, _round_up(rows, 16)))

    # Pad (copy) only when unavoidable:
    #  (a) non-lane-multiple size -> pad to next LANES multiple (layout requires it);
    #  (b) array smaller than one block -> pad to a single full block (trivial cost).
    # Lane-aligned multi-block inputs take the no-copy path; the ragged tail block is
    # masked in-kernel instead.
    target_elems = max(_round_up(n_total, LANES), block_rows * LANES)
    pad = target_elems - n_total
    if pad:
        pred_f = jnp.pad(pred_f, (0, pad))
        gt_f = jnp.pad(gt_f, (0, pad))

    rows2d = target_elems // LANES
    pred2d = pred_f.reshape(rows2d, LANES)
    gt2d = gt_f.reshape(rows2d, LANES)

    n_blocks = _cdiv(rows2d, block_rows)
    tail_mask = (n_blocks * block_rows * LANES) > n_total
    tail_valid = n_total - (n_blocks - 1) * block_rows * LANES   # valid elems in last block

    n_tc = _num_tensorcores_per_device()
    nsplit = n_tc if (n_tc > 1 and n_blocks >= 2) else 1
    n_inner = _cdiv(n_blocks, nsplit)
    has_phantom = nsplit * n_inner > n_blocks

    if has_phantom:
        # Clamp phantom block indices so their (skipped) DMA stays in bounds.
        in_map = lambda c, i: (jnp.minimum(c * n_inner + i, n_blocks - 1), 0)
    else:
        in_map = lambda c, i: (c * n_inner + i, 0)
    out_map = lambda c, i: (c, 0, 0)

    kernel = _make_bbce_kernel(n_inner, n_blocks, block_rows,
                               tail_valid, tail_mask, has_phantom)

    in_spec = pl.BlockSpec((block_rows, LANES), in_map)
    out_spec = pl.BlockSpec((None, 8, LANES), out_map)
    acc_shape = jax.ShapeDtypeStruct((nsplit, 8, LANES), jnp.float32)

    sgt_p, spos_p, sneg_p = pl.pallas_call(
        kernel,
        out_shape=(acc_shape, acc_shape, acc_shape),
        grid_spec=pltpu.PrefetchScalarGridSpec(
            num_scalar_prefetch=0,
            grid=(nsplit, n_inner),
            in_specs=[in_spec, in_spec],
            out_specs=[out_spec, out_spec, out_spec],
        ),
        compiler_params=pltpu.CompilerParams(
            dimension_semantics=("parallel", "arbitrary"),
            vmem_limit_bytes=32 * 1024 * 1024,
        ),
    )(pred2d, gt2d)

    # Tiny (<= 3 x nsplit x 4 KiB) final reductions + scalar combine, fused by jit.
    s_gt = jnp.sum(sgt_p)
    s_pos_term = jnp.sum(spos_p)          # sum of gt * softplus(-pred)
    s_neg_term = jnp.sum(sneg_p)          # sum of (1-gt) * softplus(pred)

    n_total_f = jnp.float32(n_total)
    eps = jnp.float32(1e-10)
    count_pos = s_gt + eps
    count_neg = n_total_f - s_gt          # == sum(1 - gt)
    ratio = count_neg / count_pos
    w_neg = count_pos / (count_pos + count_neg)
    mean_bce = (ratio * s_pos_term + s_neg_term) / n_total_f
    return w_neg * mean_bce


def bbce_with_logit_loss(pred, gt, max_block_rows=MAX_BLOCK_ROWS):
    """Balanced BCEWithLogitLoss; pred/gt any matching shape, returns f32 scalar."""
    return _bbce_impl(pred, gt, max_block_rows)


def _reference(pred, gt):
    """Pure-JAX reference mirroring the PyTorch module."""
    eps = 1e-10
    count_pos = jnp.sum(gt) + eps
    count_neg = jnp.sum(1.0 - gt)
    ratio = count_neg / count_pos
    w_neg = count_pos / (count_pos + count_neg)
    per_elem = (ratio * gt * jax.nn.softplus(-pred)
                + (1.0 - gt) * jax.nn.softplus(pred))
    return w_neg * jnp.mean(per_elem)


if __name__ == "__main__":
    key = jax.random.PRNGKey(0)
    k1, k2, k3, k4, k5, k6, k7, k8 = jax.random.split(key, 8)

    # Small NCHW logit/mask pair, consistent with the segmentation use of the module.
    B, C, H, W = 2, 4, 16, 16
    pred = jax.random.normal(k1, (B, C, H, W), dtype=jnp.float32)
    gt = jax.random.bernoulli(k2, p=0.3, shape=(B, C, H, W)).astype(jnp.float32)
    loss = jax.block_until_ready(bbce_with_logit_loss(pred, gt))
    ref = jax.block_until_ready(_reference(pred, gt))
    np.testing.assert_allclose(np.asarray(loss), np.asarray(ref), rtol=1e-4, atol=1e-6)

    # Ragged (non-lane-aligned) tiny shape: lane pad + single masked tail block.
    pred2 = jax.random.normal(k3, (3, 5, 7), dtype=jnp.float32)
    gt2 = jax.random.bernoulli(k4, p=0.5, shape=(3, 5, 7)).astype(jnp.float32)
    loss2 = jax.block_until_ready(bbce_with_logit_loss(pred2, gt2))
    ref2 = jax.block_until_ready(_reference(pred2, gt2))
    np.testing.assert_allclose(np.asarray(loss2), np.asarray(ref2), rtol=1e-4, atol=1e-5)

    # Multi-block path with a partial, in-kernel-masked tail block (small block size).
    pred3 = jax.random.normal(k5, (1, 1, 100, 129), dtype=jnp.float32)
    gt3 = jax.random.bernoulli(k6, p=0.2, shape=(1, 1, 100, 129)).astype(jnp.float32)
    loss3 = jax.block_until_ready(bbce_with_logit_loss(pred3, gt3, max_block_rows=64))
    ref3 = jax.block_until_ready(_reference(pred3, gt3))
    np.testing.assert_allclose(np.asarray(loss3), np.asarray(ref3), rtol=1e-4, atol=1e-5)

    # Odd block count: exercises the phantom-block clamp on 2-TensorCore devices.
    pred4 = jax.random.normal(k7, (1, 1, 160, 128), dtype=jnp.float32)
    gt4 = jax.random.bernoulli(k8, p=0.4, shape=(1, 1, 160, 128)).astype(jnp.float32)
    loss4 = jax.block_until_ready(bbce_with_logit_loss(pred4, gt4, max_block_rows=64))
    ref4 = jax.block_until_ready(_reference(pred4, gt4))
    np.testing.assert_allclose(np.asarray(loss4), np.asarray(ref4), rtol=1e-4, atol=1e-5)

    print("KERNEL_OK")
</pallas_src>

<mosaic_0001>
module attributes {stable_mosaic.version = 11 : i64} {
  func.func @kernel(%arg0: i32, %arg1: i32, %arg2: memref<16x128xf32, #tpu.memory_space<vmem>>, %arg3: memref<16x128xf32, #tpu.memory_space<vmem>>, %arg4: memref<1x8x128xf32, #tpu.memory_space<vmem>>, %arg5: memref<1x8x128xf32, #tpu.memory_space<vmem>>, %arg6: memref<1x8x128xf32, #tpu.memory_space<vmem>>) attributes {dimension_semantics = [#tpu.dimension_semantics<parallel>, #tpu.dimension_semantics<arbitrary>], iteration_bounds = array<i64: 1, 1>, scalar_prefetch = 0 : i64, scratch_operands = 0 : i64, tpu.core_type = #tpu.core_type<tc>, window_params = [{transform_indices = @transform_0, window_bounds = array<i64: 16, 128>}, {transform_indices = @transform_1, window_bounds = array<i64: 16, 128>}, {transform_indices = @transform_2, window_bounds = array<i64: 1, 8, 128>}, {transform_indices = @transform_3, window_bounds = array<i64: 1, 8, 128>}, {transform_indices = @transform_4, window_bounds = array<i64: 1, 8, 128>}]} {
    %c0_i32 = arith.constant 0 : i32
    %0 = arith.cmpi eq, %arg1, %c0_i32 : i32
    %1 = arith.extui %0 : i1 to i32
    %c0_i32_0 = arith.constant 0 : i32
    %2 = arith.cmpi ne, %1, %c0_i32_0 : i32
    scf.if %2 {
      %cst_27 = arith.constant 0.000000e+00 : f32
      %42 = vector.broadcast %cst_27 : f32 to vector<8x128xf32>
      %c0_28 = arith.constant 0 : index
      %c0_29 = arith.constant 0 : index
      %c0_30 = arith.constant 0 : index
      %43 = vector.load %arg4[%c0_28, %c0_29, %c0_30] : memref<1x8x128xf32, #tpu.memory_space<vmem>>, vector<1x8x128xf32>
      %44 = vector.shape_cast %43 : vector<1x8x128xf32> to vector<8x128xf32>
      %45 = vector.shape_cast %42 : vector<8x128xf32> to vector<1x8x128xf32>
      tpu.vector_store %arg4[%c0_28, %c0_29, %c0_30], %45 {strides = array<i32>} : memref<1x8x128xf32, #tpu.memory_space<vmem>>, vector<1x8x128xf32>,
      %cst_31 = arith.constant 0.000000e+00 : f32
      %46 = vector.broadcast %cst_31 : f32 to vector<8x128xf32>
      %c0_32 = arith.constant 0 : index
      %c0_33 = arith.constant 0 : index
      %c0_34 = arith.constant 0 : index
      %47 = vector.load %arg5[%c0_32, %c0_33, %c0_34] : memref<1x8x128xf32, #tpu.memory_space<vmem>>, vector<1x8x128xf32>
      %48 = vector.shape_cast %47 : vector<1x8x128xf32> to vector<8x128xf32>
      %49 = vector.shape_cast %46 : vector<8x128xf32> to vector<1x8x128xf32>
      tpu.vector_store %arg5[%c0_32, %c0_33, %c0_34], %49 {strides = array<i32>} : memref<1x8x128xf32, #tpu.memory_space<vmem>>, vector<1x8x128xf32>,
      %cst_35 = arith.constant 0.000000e+00 : f32
      %50 = vector.broadcast %cst_35 : f32 to vector<8x128xf32>
      %c0_36 = arith.constant 0 : index
      %c0_37 = arith.constant 0 : index
      %c0_38 = arith.constant 0 : index
      %51 = vector.load %arg6[%c0_36, %c0_37, %c0_38] : memref<1x8x128xf32, #tpu.memory_space<vmem>>, vector<1x8x128xf32>
      %52 = vector.shape_cast %51 : vector<1x8x128xf32> to vector<8x128xf32>
      %53 = vector.shape_cast %50 : vector<8x128xf32> to vector<1x8x128xf32>
      tpu.vector_store %arg6[%c0_36, %c0_37, %c0_38], %53 {strides = array<i32>} : memref<1x8x128xf32, #tpu.memory_space<vmem>>, vector<1x8x128xf32>,
    } else {
    }
    %c0 = arith.constant 0 : index
    %c0_1 = arith.constant 0 : index
    %3 = vector.load %arg2[%c0, %c0_1] : memref<16x128xf32, #tpu.memory_space<vmem>>, vector<16x128xf32>
    %c0_2 = arith.constant 0 : index
    %c0_3 = arith.constant 0 : index
    %4 = vector.load %arg3[%c0_2, %c0_3] : memref<16x128xf32, #tpu.memory_space<vmem>>, vector<16x128xf32>
    %cst = arith.constant 0.000000e+00 : f32
    %5 = vector.broadcast %cst : f32 to vector<16x128xf32>
    %6 = arith.maximumf %3, %5 : vector<16x128xf32>
    %7 = math.absf %3 : vector<16x128xf32>
    %cst_4 = arith.constant 0.000000e+00 : f32
    %8 = vector.broadcast %cst_4 : f32 to vector<16x128xf32>
    %9 = arith.subf %8, %7 : vector<16x128xf32>
    %10 = math.exp %9 : vector<16x128xf32>
    %11 = math.log1p %10 : vector<16x128xf32>
    %12 = arith.addf %6, %11 : vector<16x128xf32>
    %13 = arith.subf %12, %3 : vector<16x128xf32>
    %14 = arith.mulf %4, %13 : vector<16x128xf32>
    %cst_5 = arith.constant 1.000000e+00 : f32
    %15 = vector.broadcast %cst_5 : f32 to vector<16x128xf32>
    %16 = arith.subf %15, %4 : vector<16x128xf32>
    %17 = arith.mulf %16, %12 : vector<16x128xf32>
    %c0_6 = arith.constant 0 : index
    %c0_7 = arith.constant 0 : index
    %c0_8 = arith.constant 0 : index
    %18 = vector.load %arg4[%c0_6, %c0_7, %c0_8] : memref<1x8x128xf32, #tpu.memory_space<vmem>>, vector<1x8x128xf32>
    %19 = vector.shape_cast %18 : vector<1x8x128xf32> to vector<8x128xf32>
    %20 = vector.shape_cast %4 : vector<16x128xf32> to vector<2x8x128xf32>
    %cst_9 = arith.constant dense<0.000000e+00> : vector<8x128xf32>
    %21 = vector.multi_reduction <add>, %20, %cst_9 [0] : vector<2x8x128xf32> to vector<8x128xf32>
    %22 = arith.addf %19, %21 : vector<8x128xf32>
    %c0_10 = arith.constant 0 : index
    %c0_11 = arith.constant 0 : index
    %c0_12 = arith.constant 0 : index
    %23 = vector.load %arg4[%c0_10, %c0_11, %c0_12] : memref<1x8x128xf32, #tpu.memory_space<vmem>>, vector<1x8x128xf32>
    %24 = vector.shape_cast %23 : vector<1x8x128xf32> to vector<8x128xf32>
    %25 = vector.shape_cast %22 : vector<8x128xf32> to vector<1x8x128xf32>
    tpu.vector_store %arg4[%c0_10, %c0_11, %c0_12], %25 {strides = array<i32>} : memref<1x8x128xf32, #tpu.memory_space<vmem>>, vector<1x8x128xf32>,
    %c0_13 = arith.constant 0 : index
    %c0_14 = arith.constant 0 : index
    %c0_15 = arith.constant 0 : index
    %26 = vector.load %arg5[%c0_13, %c0_14, %c0_15] : memref<1x8x128xf32, #tpu.memory_space<vmem>>, vector<1x8x128xf32>
    %27 = vector.shape_cast %26 : vector<1x8x128xf32> to vector<8x128xf32>
    %28 = vector.shape_cast %14 : vector<16x128xf32> to vector<2x8x128xf32>
    %cst_16 = arith.constant dense<0.000000e+00> : vector<8x128xf32>
    %29 = vector.multi_reduction <add>, %28, %cst_16 [0] : vector<2x8x128xf32> to vector<8x128xf32>
    %30 = arith.addf %27, %29 : vector<8x128xf32>
    %c0_17 = arith.constant 0 : index
    %c0_18 = arith.constant 0 : index
    %c0_19 = arith.constant 0 : index
    %31 = vector.load %arg5[%c0_17, %c0_18, %c0_19] : memref<1x8x128xf32, #tpu.memory_space<vmem>>, vector<1x8x128xf32>
    %32 = vector.shape_cast %31 : vector<1x8x128xf32> to vector<8x128xf32>
    %33 = vector.shape_cast %30 : vector<8x128xf32> to vector<1x8x128xf32>
    tpu.vector_store %arg5[%c0_17, %c0_18, %c0_19], %33 {strides = array<i32>} : memref<1x8x128xf32, #tpu.memory_space<vmem>>, vector<1x8x128xf32>,
    %c0_20 = arith.constant 0 : index
    %c0_21 = arith.constant 0 : index
    %c0_22 = arith.constant 0 : index
    %34 = vector.load %arg6[%c0_20, %c0_21, %c0_22] : memref<1x8x128xf32, #tpu.memory_space<vmem>>, vector<1x8x128xf32>
    %35 = vector.shape_cast %34 : vector<1x8x128xf32> to vector<8x128xf32>
    %36 = vector.shape_cast %17 : vector<16x128xf32> to vector<2x8x128xf32>
    %cst_23 = arith.constant dense<0.000000e+00> : vector<8x128xf32>
    %37 = vector.multi_reduction <add>, %36, %cst_23 [0] : vector<2x8x128xf32> to vector<8x128xf32>
    %38 = arith.addf %35, %37 : vector<8x128xf32>
    %c0_24 = arith.constant 0 : index
    %c0_25 = arith.constant 0 : index
    %c0_26 = arith.constant 0 : index
    %39 = vector.load %arg6[%c0_24, %c0_25, %c0_26] : memref<1x8x128xf32, #tpu.memory_space<vmem>>, vector<1x8x128xf32>
    %40 = vector.shape_cast %39 : vector<1x8x128xf32> to vector<8x128xf32>
    %41 = vector.shape_cast %38 : vector<8x128xf32> to vector<1x8x128xf32>
    tpu.vector_store %arg6[%c0_24, %c0_25, %c0_26], %41 {strides = array<i32>} : memref<1x8x128xf32, #tpu.memory_space<vmem>>, vector<1x8x128xf32>,
    return
  }
  func.func @transform_0(%arg0: i32, %arg1: i32) -> (i32, i32) {
    %c1_i32 = arith.constant 1 : i32
    %0 = arith.muli %arg0, %c1_i32 : i32
    %1 = arith.addi %0, %arg1 : i32
    %c0_i32 = arith.constant 0 : i32
    %c0_i32_0 = arith.constant 0 : i32
    return %1, %c0_i32 : i32, i32
  }
  func.func @transform_1(%arg0: i32, %arg1: i32) -> (i32, i32) {
    %c1_i32 = arith.constant 1 : i32
    %0 = arith.muli %arg0, %c1_i32 : i32
    %1 = arith.addi %0, %arg1 : i32
    %c0_i32 = arith.constant 0 : i32
    %c0_i32_0 = arith.constant 0 : i32
    return %1, %c0_i32 : i32, i32
  }
  func.func @transform_2(%arg0: i32, %arg1: i32) -> (i32, i32, i32) {
    %c0_i32 = arith.constant 0 : i32
    %c0_i32_0 = arith.constant 0 : i32
    %c0_i32_1 = arith.constant 0 : i32
    return %arg0, %c0_i32, %c0_i32_0 : i32, i32, i32
  }
  func.func @transform_3(%arg0: i32, %arg1: i32) -> (i32, i32, i32) {
    %c0_i32 = arith.constant 0 : i32
    %c0_i32_0 = arith.constant 0 : i32
    %c0_i32_1 = arith.constant 0 : i32
    return %arg0, %c0_i32, %c0_i32_0 : i32, i32, i32
  }
  func.func @transform_4(%arg0: i32, %arg1: i32) -> (i32, i32, i32) {
    %c0_i32 = arith.constant 0 : i32
    %c0_i32_0 = arith.constant 0 : i32
    %c0_i32_1 = arith.constant 0 : i32
    return %arg0, %c0_i32, %c0_i32_0 : i32, i32, i32
  }
}

</mosaic_0001>

<bundles_post_ra>
// kernel: _bbce_impl.1
= control target key start
LH: loop header
LB: loop body
LE: loop exit
PB: predicated region body
PF: predicated region fallthrough
CT: control target
= control target key end

     0   :  { %s198_s1 = inlined_call_operand.vmem [shape: f32[16,128], index: 1, kind: input, shape index: {}]   ;;  %s199_s0 = inlined_call_operand.vmem [shape: f32[16,128], index: 0, kind: input, shape index: {}]   ;;  %s200_s2 = inlined_call_operand.vmem [shape: f32[1,8,128], index: 2, kind: output, shape index: {0}]   ;;  %s201_s4 = inlined_call_operand.vmem [shape: f32[1,8,128], index: 4, kind: output, shape index: {2}]   ;;  %s202_s3 = inlined_call_operand.vmem [shape: f32[1,8,128], index: 3, kind: output, shape index: {1}]  }
   0x1   :  { %v67_v0 = vld [vmem:[%s198_s1] sm:$0xff]  ;;  %v68_v1 = vld [vmem:[%s198_s1 + $0x8] sm:$0xff] }
   0x2   :  { %v65_v2 = vld [vmem:[%s199_s0] sm:$0xff]  ;;  %v108_v3 = vadd.f32 %v68_v1, %v67_v0  ;;  %v66_v4 = vld [vmem:[%s199_s0 + $0x8] sm:$0xff]  ;;  %v103_v29 = vsub.f32 1.0, %v67_v0  ;;  %v104_v31 = vsub.f32 1.0, %v68_v1 }
   0x3   :  { %v71_v5 = vand.u32 2147483647, %v65_v2  ;;  %v72_v6 = vand.u32 2147483647, %v66_v4  ;;  %v69_v23 = vmax.f32 %v65_v2, 0.0  ;;  %v70_v26 = vmax.f32 %v66_v4, 0.0 }
   0x4   :  { %110 = vst [vmem:[%s200_s2] sm:$0xff] %v108_v3 }
   0x5   :  { %v73_v7 = vsub.f32 0.0, %v71_v5  ;;  %v74_v8 = vsub.f32 0.0, %v72_v6 }
   0x7   :  { %v75_v9 = vmul.f32 1.442695, %v73_v7  ;;  %v77_v10 = vmul.f32 1.442695, %v74_v8 }
   0x9   :  { %144 = vpow2.f32 %v75_v9 }
   0xa   :  { %146 = vpow2.f32 %v77_v10 }
  0x13   :  { %v145_v11 = vpop.eup %144 }
  0x14   :  { %v147_v12 = vpop.eup %146  ;;  %v79_v13 = vadd.f32 1.0, %v145_v11  ;;  %v82_v15 = vmul.f32 -0.5, %v145_v11  ;;  %v85_v18 = vand.u32 2147483647, %v145_v11 }
  0x15   :  { %v88_v14 = vadd.f32 1.0, %v147_v12  ;;  %v91_v16 = vmul.f32 -0.5, %v147_v12  ;;  %v94_v20 = vand.u32 2147483647, %v147_v12 }
  0x16   :  { %148 = vlog2.f32 %v79_v13  ;;  %v83_v17 = vadd.f32 1.0, %v82_v15  ;;  %vm86_vm0 = vcmp.lt.f32.partialorder %v85_v18, 0.0004427343 }
  0x17   :  { %150 = vlog2.f32 %v88_v14  ;;  %v92_v19 = vadd.f32 1.0, %v91_v16  ;;  %vm95_vm1 = vcmp.lt.f32.partialorder %v94_v20, 0.0004427343 }
  0x18   :  { %v84_v21 = vmul.f32 %v145_v11, %v83_v17 }
  0x19   :  { %v93_v24 = vmul.f32 %v147_v12, %v92_v19 }
  0x20   :  { %v149_v22 = vpop.eup %148 }
  0x21   :  { %v151_v25 = vpop.eup %150  ;;  %v81_v27 = vmul.f32 0.6931472, %v149_v22 }
  0x22   :  { %v90_v28 = vmul.f32 0.6931472, %v151_v25 }
  0x23   :  { %v87_v30 = vsel %vm86_vm0, %v84_v21, %v81_v27 }
  0x24   :  { %v96_v32 = vsel %vm95_vm1, %v93_v24, %v90_v28  ;;  %v97_v33 = vadd.f32 %v87_v30, %v69_v23 }
  0x25   :  { %v98_v34 = vadd.f32 %v96_v32, %v70_v26 }
  0x26   :  { %v99_v35 = vsub.f32 %v97_v33, %v65_v2  ;;  %v105_v36 = vmul.f32 %v103_v29, %v97_v33 }
  0x27   :  { %v100_v37 = vsub.f32 %v98_v34, %v66_v4  ;;  %v106_v38 = vmul.f32 %v104_v31, %v98_v34 }
  0x28   :  { %v101_v39 = vmul.f32 %v99_v35, %v67_v0 }
  0x29   :  { %v102_v40 = vmul.f32 %v100_v37, %v68_v1  ;;  %v116_v41 = vadd.f32 %v106_v38, %v105_v36 }
  0x2b   :  { %v112_v42 = vadd.f32 %v102_v40, %v101_v39  ;;  %118 = vst [vmem:[%s201_s4] sm:$0xff] %v116_v41 }
  0x2d   :  { %114 = vst [vmem:[%s202_s3] sm:$0xff] %v112_v42 }

</bundles_post_ra>
